<compile_context>
chip_gen: v6e
topology: v6e:2x2x1
jax: 0.10.0
libtpu: 0.0.40
codegen_flags: <defaults>
</compile_context>

<pallas_src>
import jax
import jax.numpy as jnp
from jax.experimental import pallas as pl
from jax.experimental.pallas import tpu as pltpu


def densenet_kernel(x_ref,                    # (2, TB)   input, batch on lanes
                    w_ih_ref, b_ih_ref,       # (H, 2), (H, 1)   in_to_hid
                    w_ih2_ref,                # (H, 2)           in_to_hid2 (no bias)
                    w_hh_ref, b_hh_ref,       # (H, H), (H, 1)   hid1_to_hid2
                    w_io_ref,                 # (1, 2)  SMEM     in_to_out (no bias)
                    w_h1o_ref,                # (H, 1)           hid1_to_out (no bias)
                    w_h2o_ref, b_h2o_ref,     # (H, 1), (1, 1) SMEM  hid2_to_out
                    out_ref):                 # (1, TB)
    x0 = x_ref[0:1, :]          # (1, TB)
    x1 = x_ref[1:2, :]          # (1, TB)

    # hid1 = tanh(in_to_hid(x))  -- K=2 projection as a VPU rank-2 update.
    h1_pre = (w_ih_ref[:, 0:1] * x0
              + w_ih_ref[:, 1:2] * x1
              + b_ih_ref[...])                              # (H, TB)
    hid1 = jnp.tanh(h1_pre)

    # hid2 = tanh(in_to_hid2(x) + hid1_to_hid2(hid1))
    # Only the (H, H) contraction uses the MXU.
    h2_pre = (w_ih2_ref[:, 0:1] * x0
              + w_ih2_ref[:, 1:2] * x1
              + jnp.dot(w_hh_ref[...], hid1, preferred_element_type=jnp.float32)
              + b_hh_ref[...])                              # (H, TB)
    hid2 = jnp.tanh(h2_pre)

    # out = sigmoid(in_to_out(x) + hid1_to_out(hid1) + hid2_to_out(hid2))
    # N=1 heads as VPU multiply + cross-sublane reduction -> lane-dense (1, TB).
    out_pre = (w_io_ref[0, 0] * x0
               + w_io_ref[0, 1] * x1
               + jnp.sum(w_h1o_ref[...] * hid1, axis=0, keepdims=True)
               + jnp.sum(w_h2o_ref[...] * hid2, axis=0, keepdims=True)
               + b_h2o_ref[0, 0])                           # (1, TB)
    out_ref[...] = jax.nn.sigmoid(out_pre).astype(out_ref.dtype)


def densenet_forward(x, params, *, block_b=512):
    """x: (B, 2) float32 -> (B, 1) float32."""
    B = x.shape[0]
    H = params["w_hh"].shape[0]

    TB = block_b
    num_blocks = pl.cdiv(B, TB)
    Bp = num_blocks * TB

    # Wrapper-side plumbing: transpose to batch-on-lanes and pad batch to TB.
    x_t = jnp.zeros((2, Bp), jnp.float32).at[:, :B].set(x.T.astype(jnp.float32))

    weight_spec = lambda shape: pl.BlockSpec(shape, lambda i: (0, 0))
    smem_spec = lambda shape: pl.BlockSpec(
        shape, lambda i: (0, 0), memory_space=pltpu.MemorySpace.SMEM)

    out_t = pl.pallas_call(
        densenet_kernel,
        out_shape=jax.ShapeDtypeStruct((1, Bp), jnp.float32),
        grid=(num_blocks,),
        in_specs=[
            pl.BlockSpec((2, TB), lambda i: (0, i)),   # x (blocked along batch)
            weight_spec((H, 2)),                       # w_ih   (VMEM-resident)
            weight_spec((H, 1)),                       # b_ih
            weight_spec((H, 2)),                       # w_ih2
            weight_spec((H, H)),                       # w_hh
            weight_spec((H, 1)),                       # b_hh
            smem_spec((1, 2)),                         # w_io   (scalars in SMEM)
            weight_spec((H, 1)),                       # w_h1o
            weight_spec((H, 1)),                       # w_h2o
            smem_spec((1, 1)),                         # b_h2o  (scalar in SMEM)
        ],
        out_specs=pl.BlockSpec((1, TB), lambda i: (0, i)),
        compiler_params=pltpu.CompilerParams(
            dimension_semantics=("parallel",)),
    )(x_t,
      params["w_ih"], params["b_ih"],
      params["w_ih2"],
      params["w_hh"], params["b_hh"],
      params["w_io"],
      params["w_h1o"],
      params["w_h2o"], params["b_h2o"])

    return out_t[0, :B].reshape(B, 1)


def init_params(key, num_hid):
    """Deterministic init mirroring nn.Linear's U(-1/sqrt(fan_in), 1/sqrt(fan_in)).
    Weights stored as (out_features, in_features); 1-output heads as (H, 1)."""
    ks = jax.random.split(key, 10)

    def uni(k, shape, fan_in):
        bound = 1.0 / jnp.sqrt(jnp.float32(fan_in))
        return jax.random.uniform(k, shape, jnp.float32, -bound, bound)

    H = num_hid
    return {
        "w_ih":  uni(ks[0], (H, 2), 2),
        "b_ih":  uni(ks[1], (H, 1), 2),
        "w_ih2": uni(ks[2], (H, 2), 2),
        "w_hh":  uni(ks[3], (H, H), H),
        "b_hh":  uni(ks[4], (H, 1), H),
        "w_io":  uni(ks[5], (1, 2), 2),
        "w_h1o": uni(ks[6], (H, 1), H),
        "w_h2o": uni(ks[7], (H, 1), H),
        "b_h2o": uni(ks[8], (1, 1), H),
    }


def reference_forward(x, p):
    hid1 = jnp.tanh(x @ p["w_ih"].T + p["b_ih"].T)
    hid2 = jnp.tanh(x @ p["w_ih2"].T + hid1 @ p["w_hh"].T + p["b_hh"].T)
    out = x @ p["w_io"].T + hid1 @ p["w_h1o"] + hid2 @ p["w_h2o"] + p["b_h2o"]
    return jax.nn.sigmoid(out)


if __name__ == "__main__":
    key = jax.random.PRNGKey(0)
    k_x, k_p = jax.random.split(key)

    batch = 1000          # not a multiple of the block -> exercises padding
    num_hid = 32
    x = jax.random.normal(k_x, (batch, 2), jnp.float32)
    params = init_params(k_p, num_hid)

    out = densenet_forward(x, params, block_b=512)
    out = jax.block_until_ready(out)

    ref = reference_forward(x, params)
    assert out.shape == (batch, 1)
    assert jnp.allclose(out, ref, atol=1e-5, rtol=1e-5), "mismatch vs reference"

    print("KERNEL_OK")
</pallas_src>

<mosaic_0001>
module attributes {stable_mosaic.version = 11 : i64} {
  func.func @densenet_kernel(%arg0: i32, %arg1: memref<2x512xf32, #tpu.memory_space<vmem>>, %arg2: memref<32x2xf32, #tpu.memory_space<vmem>>, %arg3: memref<32x1xf32, #tpu.memory_space<vmem>>, %arg4: memref<32x2xf32, #tpu.memory_space<vmem>>, %arg5: memref<32x32xf32, #tpu.memory_space<vmem>>, %arg6: memref<32x1xf32, #tpu.memory_space<vmem>>, %arg7: memref<1x2xf32, #tpu.memory_space<smem>>, %arg8: memref<32x1xf32, #tpu.memory_space<vmem>>, %arg9: memref<32x1xf32, #tpu.memory_space<vmem>>, %arg10: memref<1x1xf32, #tpu.memory_space<smem>>, %arg11: memref<1x512xf32, #tpu.memory_space<vmem>>) attributes {dimension_semantics = [#tpu.dimension_semantics<parallel>], iteration_bounds = array<i64: 2>, scalar_prefetch = 0 : i64, scratch_operands = 0 : i64, tpu.core_type = #tpu.core_type<tc>, window_params = [{transform_indices = @transform_0, window_bounds = array<i64: 2, 512>}, {pipeline_mode = #tpu.pipeline_mode<synchronous>, transform_indices = @transform_1, window_bounds = array<i64: 32, 2>}, {pipeline_mode = #tpu.pipeline_mode<synchronous>, transform_indices = @transform_2, window_bounds = array<i64: 32, 1>}, {pipeline_mode = #tpu.pipeline_mode<synchronous>, transform_indices = @transform_3, window_bounds = array<i64: 32, 2>}, {pipeline_mode = #tpu.pipeline_mode<synchronous>, transform_indices = @transform_4, window_bounds = array<i64: 32, 32>}, {pipeline_mode = #tpu.pipeline_mode<synchronous>, transform_indices = @transform_5, window_bounds = array<i64: 32, 1>}, {transform_indices = @transform_6, window_bounds = array<i64: 1, 2>}, {pipeline_mode = #tpu.pipeline_mode<synchronous>, transform_indices = @transform_7, window_bounds = array<i64: 32, 1>}, {pipeline_mode = #tpu.pipeline_mode<synchronous>, transform_indices = @transform_8, window_bounds = array<i64: 32, 1>}, {transform_indices = @transform_9, window_bounds = array<i64: 1, 1>}, {transform_indices = @transform_10, window_bounds = array<i64: 1, 512>}]} {
    %c0 = arith.constant 0 : index
    %c0_0 = arith.constant 0 : index
    %0 = vector.load %arg1[%c0, %c0_0] : memref<2x512xf32, #tpu.memory_space<vmem>>, vector<1x512xf32>
    %c1 = arith.constant 1 : index
    %c0_1 = arith.constant 0 : index
    %1 = vector.load %arg1[%c1, %c0_1] : memref<2x512xf32, #tpu.memory_space<vmem>>, vector<1x512xf32>
    %c0_2 = arith.constant 0 : index
    %c0_3 = arith.constant 0 : index
    %2 = vector.load %arg2[%c0_2, %c0_3] : memref<32x2xf32, #tpu.memory_space<vmem>>, vector<32x1xf32>
    %3 = vector.broadcast %2 : vector<32x1xf32> to vector<32x512xf32>
    %4 = vector.broadcast %0 : vector<1x512xf32> to vector<32x512xf32>
    %5 = arith.mulf %3, %4 : vector<32x512xf32>
    %c0_4 = arith.constant 0 : index
    %c1_5 = arith.constant 1 : index
    %6 = vector.load %arg2[%c0_4, %c1_5] : memref<32x2xf32, #tpu.memory_space<vmem>>, vector<32x1xf32>
    %7 = vector.broadcast %6 : vector<32x1xf32> to vector<32x512xf32>
    %8 = vector.broadcast %1 : vector<1x512xf32> to vector<32x512xf32>
    %9 = arith.mulf %7, %8 : vector<32x512xf32>
    %10 = arith.addf %5, %9 : vector<32x512xf32>
    %c0_6 = arith.constant 0 : index
    %c0_7 = arith.constant 0 : index
    %11 = vector.load %arg3[%c0_6, %c0_7] : memref<32x1xf32, #tpu.memory_space<vmem>>, vector<32x1xf32>
    %12 = vector.broadcast %11 : vector<32x1xf32> to vector<32x512xf32>
    %13 = arith.addf %10, %12 : vector<32x512xf32>
    %14 = math.tanh %13 : vector<32x512xf32>
    %c0_8 = arith.constant 0 : index
    %c0_9 = arith.constant 0 : index
    %15 = vector.load %arg4[%c0_8, %c0_9] : memref<32x2xf32, #tpu.memory_space<vmem>>, vector<32x1xf32>
    %16 = vector.broadcast %15 : vector<32x1xf32> to vector<32x512xf32>
    %17 = vector.broadcast %0 : vector<1x512xf32> to vector<32x512xf32>
    %18 = arith.mulf %16, %17 : vector<32x512xf32>
    %c0_10 = arith.constant 0 : index
    %c1_11 = arith.constant 1 : index
    %19 = vector.load %arg4[%c0_10, %c1_11] : memref<32x2xf32, #tpu.memory_space<vmem>>, vector<32x1xf32>
    %20 = vector.broadcast %19 : vector<32x1xf32> to vector<32x512xf32>
    %21 = vector.broadcast %1 : vector<1x512xf32> to vector<32x512xf32>
    %22 = arith.mulf %20, %21 : vector<32x512xf32>
    %23 = arith.addf %18, %22 : vector<32x512xf32>
    %c0_12 = arith.constant 0 : index
    %c0_13 = arith.constant 0 : index
    %24 = vector.load %arg5[%c0_12, %c0_13] : memref<32x32xf32, #tpu.memory_space<vmem>>, vector<32x32xf32>
    %cst = arith.constant dense<0.000000e+00> : vector<32x512xf32>
    %25 = tpu.matmul %24, %14, %cst {dimension_numbers = #tpu.dot_dimension_numbers<[1], [0], [0], [1], [0, 0, 1, 1], [], []>} : vector<32x32xf32>, vector<32x512xf32>, vector<32x512xf32> -> vector<32x512xf32>
    %26 = arith.addf %23, %25 : vector<32x512xf32>
    %c0_14 = arith.constant 0 : index
    %c0_15 = arith.constant 0 : index
    %27 = vector.load %arg6[%c0_14, %c0_15] : memref<32x1xf32, #tpu.memory_space<vmem>>, vector<32x1xf32>
    %28 = vector.broadcast %27 : vector<32x1xf32> to vector<32x512xf32>
    %29 = arith.addf %26, %28 : vector<32x512xf32>
    %30 = math.tanh %29 : vector<32x512xf32>
    %c0_16 = arith.constant 0 : index
    %c0_17 = arith.constant 0 : index
    %31 = memref.load %arg7[%c0_16, %c0_17] : memref<1x2xf32, #tpu.memory_space<smem>>
    %32 = vector.broadcast %31 : f32 to vector<1x512xf32>
    %33 = arith.mulf %32, %0 : vector<1x512xf32>
    %c0_18 = arith.constant 0 : index
    %c1_19 = arith.constant 1 : index
    %34 = memref.load %arg7[%c0_18, %c1_19] : memref<1x2xf32, #tpu.memory_space<smem>>
    %35 = vector.broadcast %34 : f32 to vector<1x512xf32>
    %36 = arith.mulf %35, %1 : vector<1x512xf32>
    %37 = arith.addf %33, %36 : vector<1x512xf32>
    %c0_20 = arith.constant 0 : index
    %c0_21 = arith.constant 0 : index
    %38 = vector.load %arg8[%c0_20, %c0_21] : memref<32x1xf32, #tpu.memory_space<vmem>>, vector<32x1xf32>
    %39 = vector.broadcast %38 : vector<32x1xf32> to vector<32x512xf32>
    %40 = arith.mulf %39, %14 : vector<32x512xf32>
    %cst_22 = arith.constant dense<0.000000e+00> : vector<512xf32>
    %41 = vector.multi_reduction <add>, %40, %cst_22 [0] : vector<32x512xf32> to vector<512xf32>
    %42 = vector.shape_cast %41 : vector<512xf32> to vector<1x512xf32>
    %43 = arith.addf %37, %42 : vector<1x512xf32>
    %c0_23 = arith.constant 0 : index
    %c0_24 = arith.constant 0 : index
    %44 = vector.load %arg9[%c0_23, %c0_24] : memref<32x1xf32, #tpu.memory_space<vmem>>, vector<32x1xf32>
    %45 = vector.broadcast %44 : vector<32x1xf32> to vector<32x512xf32>
    %46 = arith.mulf %45, %30 : vector<32x512xf32>
    %cst_25 = arith.constant dense<0.000000e+00> : vector<512xf32>
    %47 = vector.multi_reduction <add>, %46, %cst_25 [0] : vector<32x512xf32> to vector<512xf32>
    %48 = vector.shape_cast %47 : vector<512xf32> to vector<1x512xf32>
    %49 = arith.addf %43, %48 : vector<1x512xf32>
    %c0_26 = arith.constant 0 : index
    %c0_27 = arith.constant 0 : index
    %50 = memref.load %arg10[%c0_26, %c0_27] : memref<1x1xf32, #tpu.memory_space<smem>>
    %51 = vector.broadcast %50 : f32 to vector<1x512xf32>
    %52 = arith.addf %49, %51 : vector<1x512xf32>
    %53 = arith.negf %52 : vector<1x512xf32>
    %54 = math.exp %53 : vector<1x512xf32>
    %cst_28 = arith.constant 1.000000e+00 : f32
    %55 = vector.broadcast %cst_28 : f32 to vector<1x512xf32>
    %56 = arith.addf %55, %54 : vector<1x512xf32>
    %57 = arith.divf %55, %56 : vector<1x512xf32>
    %c0_29 = arith.constant 0 : index
    %c0_30 = arith.constant 0 : index
    %58 = vector.load %arg11[%c0_29, %c0_30] : memref<1x512xf32, #tpu.memory_space<vmem>>, vector<1x512xf32>
    tpu.vector_store %arg11[%c0_29, %c0_30], %57 {strides = array<i32>} : memref<1x512xf32, #tpu.memory_space<vmem>>, vector<1x512xf32>,
    return
  }
  func.func @transform_0(%arg0: i32) -> (i32, i32) {
    %c0_i32 = arith.constant 0 : i32
    %c0_i32_0 = arith.constant 0 : i32
    return %c0_i32, %arg0 : i32, i32
  }
  func.func @transform_1(%arg0: i32) -> (i32, i32) {
    %c0_i32 = arith.constant 0 : i32
    %c0_i32_0 = arith.constant 0 : i32
    %c0_i32_1 = arith.constant 0 : i32
    return %c0_i32, %c0_i32_0 : i32, i32
  }
  func.func @transform_2(%arg0: i32) -> (i32, i32) {
    %c0_i32 = arith.constant 0 : i32
    %c0_i32_0 = arith.constant 0 : i32
    %c0_i32_1 = arith.constant 0 : i32
    return %c0_i32, %c0_i32_0 : i32, i32
  }
  func.func @transform_3(%arg0: i32) -> (i32, i32) {
    %c0_i32 = arith.constant 0 : i32
    %c0_i32_0 = arith.constant 0 : i32
    %c0_i32_1 = arith.constant 0 : i32
    return %c0_i32, %c0_i32_0 : i32, i32
  }
  func.func @transform_4(%arg0: i32) -> (i32, i32) {
    %c0_i32 = arith.constant 0 : i32
    %c0_i32_0 = arith.constant 0 : i32
    %c0_i32_1 = arith.constant 0 : i32
    return %c0_i32, %c0_i32_0 : i32, i32
  }
  func.func @transform_5(%arg0: i32) -> (i32, i32) {
    %c0_i32 = arith.constant 0 : i32
    %c0_i32_0 = arith.constant 0 : i32
    %c0_i32_1 = arith.constant 0 : i32
    return %c0_i32, %c0_i32_0 : i32, i32
  }
  func.func @transform_6(%arg0: i32) -> (i32, i32) {
    %c0_i32 = arith.constant 0 : i32
    %c0_i32_0 = arith.constant 0 : i32
    %c0_i32_1 = arith.constant 0 : i32
    return %c0_i32, %c0_i32_0 : i32, i32
  }
  func.func @transform_7(%arg0: i32) -> (i32, i32) {
    %c0_i32 = arith.constant 0 : i32
    %c0_i32_0 = arith.constant 0 : i32
    %c0_i32_1 = arith.constant 0 : i32
    return %c0_i32, %c0_i32_0 : i32, i32
  }
  func.func @transform_8(%arg0: i32) -> (i32, i32) {
    %c0_i32 = arith.constant 0 : i32
    %c0_i32_0 = arith.constant 0 : i32
    %c0_i32_1 = arith.constant 0 : i32
    return %c0_i32, %c0_i32_0 : i32, i32
  }
  func.func @transform_9(%arg0: i32) -> (i32, i32) {
    %c0_i32 = arith.constant 0 : i32
    %c0_i32_0 = arith.constant 0 : i32
    %c0_i32_1 = arith.constant 0 : i32
    return %c0_i32, %c0_i32_0 : i32, i32
  }
  func.func @transform_10(%arg0: i32) -> (i32, i32) {
    %c0_i32 = arith.constant 0 : i32
    %c0_i32_0 = arith.constant 0 : i32
    return %c0_i32, %arg0 : i32, i32
  }
}

</mosaic_0001>

<bundles_post_ra>
// kernel: tpu_custom_call.1
= control target key start
LH: loop header
LB: loop body
LE: loop exit
PB: predicated region body
PF: predicated region fallthrough
CT: control target
= control target key end

     0   :  { %s1950_s0 = inlined_call_operand.vmem [shape: f32[2,1024], index: 0, kind: input, shape index: {}]   ;;  %s1951_s1 = inlined_call_operand.vmem [shape: f32[32,2], index: 1, kind: input, shape index: {}]   ;;  %s1952_s2 = inlined_call_operand.vmem [shape: f32[32,1], index: 2, kind: input, shape index: {}]   ;;  %s1953_s3 = inlined_call_operand.vmem [shape: f32[32,2], index: 3, kind: input, shape index: {}]   ;;  %s1954_s4 = inlined_call_operand.vmem [shape: f32[32,32], index: 4, kind: input, shape index: {}]   ;;  %s1955_s5 = inlined_call_operand.vmem [shape: f32[32,1], index: 5, kind: input, shape index: {}]   ;;  %s1956_s6 = inlined_call_operand.vmem [shape: f32[1,2], index: 6, kind: input, shape index: {}]   ;;  %s1957_s7 = inlined_call_operand.vmem [shape: f32[32,1], index: 7, kind: input, shape index: {}]   ;;  %s1958_s8 = inlined_call_operand.vmem [shape: f32[32,1], index: 8, kind: input, shape index: {}]   ;;  %s1959_s9 = inlined_call_operand.<no memory space> [shape: f32[1,1], index: 9, kind: input, shape index: {}]   ;;  %s1960_s10 = inlined_call_operand.hbm [shape: f32[1,1024], index: 10, kind: output, shape index: {}]  }
   0x1   :  { %1961 = sst [smem:[#allocation9_spill]] %s1951_s1 }
   0x2   :  { %15 = sst [smem:[#allocation2]] %s1959_s9 }
   0x3   :  { %16 = vsyncpa [#allocation5], 0 }
   0x4   :  { %17 = vsyncpa [#allocation4], 0 }
   0x5   :  { %19 = vsyncpa [#allocation4 + $0x1], 0  ;;  %s1543_s15 = smov 0   ;;  %s1545_s16 = smov 0  }
   0x6   :  { %s1547_s17 = smov 0   ;;  %s1549_s18 = smov 0  }
   0x7 LB: > { %s1564_s9 = sadd.s32 4294967295, %s1477_s18   ;;  %s1239_s19 = sadd.s32 4294967294, %s1477_s18   ;;  %s1477_s18 = sphi %s1549_s18, %s1969_s18   ;;  %s1473_s17 = sphi %s1547_s17, %s1968_s17   ;;  %s1469_s16 = sphi %s1545_s16, %s1967_s16   ;;  %s1465_s15 = sphi %s1543_s15, %s1966_s15  }
   0x8   : > { %s1568_s20 = sadd.s32 1, %s1477_s18   ;;  %s247_s21 = sadd.s32 1, %s1473_s17 }
   0x9   : > { %s244_s22 = ssub.s32 %s1477_s18, %s1568_s20  ;;  %p257_p0 = scmp.ne.s32.totalorder %s1473_s17, %s1469_s16 }
   0xa   : > { %p245_p1 = scmp.eq.s32.totalorder %s244_s22, 0  ;;  %p258_p2 = scmp.eq.s32.totalorder %s1564_s9, 1 }
   0xb   : > { %p263_p3 = scmp.ne.s32.totalorder %s1469_s16, %s1465_s15  ;;  %p264_p4 = scmp.eq.s32.totalorder %s1239_s19, 1 }
   0xc   : > { %s1579_s23 = scalar_select %p245_p1, %s1473_s17, %s247_s21  }
   0xd   : > { %p1581_p5 = por %p258_p2, %p257_p0  ;;  %p1585_p6 = por %p264_p4, %p263_p3 }
   0xe   : > { %p1240_p7 = scmp.ge.s32.totalorder %s1477_s18, 1  ;;  %p271_p8 = scmp.lt.s32.totalorder %s1477_s18, 3 }
   0xf   : > { %p1279_p9 = scmp.eq.s32.totalorder %s1564_s9, 0  ;;  %s299_s29 = sshll.u32 %s1956_s6, 4  ;;  %s300_s29 = int_to_ptr.vmem [resolvable:$true] %s299_s29 }
  0x10   : > { %p1592_p10 = pnand %p1240_p7, %p271_p8  ;;  %s1398_s30 = scalar_lea.vmem %s300_s29, 16 }
  0x11   : > { %p1399_p13 = scmp.ne.s32.totalorder %s300_s29, %s1398_s30  ;;  %p1406_p3 = scmp.lt.s32.totalorder %s300_s29, %s300_s29 }
  0x12   : > { %p1271_p11 = pneg %p1592_p10  ;;  %p1407_p4 = scmp.lt.s32.totalorder %s1398_s30, %s1398_s30 }
  0x14   : > { %p1272_p12 = pnand %p1279_p9, %p1271_p11  ;;  %p1408_p7 = por %p1407_p4, %p1406_p3 }
  0x16   : > { %p1400_p0 = pneg %p1272_p12 }
  0x18   : > { %p1401_p1 = pnand %p1400_p0, %p1399_p13 }
  0x1a   : > { %p1402_p2 = pneg %p1401_p1 }
  0x1c   : > { %p1409_p8 = pnand %p1408_p7, %p1402_p2 }
  0x1e   : > { %1412 = shalt.err (!%p1409_p8)
}
  0x1f   : > { %s1479_s11 = smov [#allocation3]   ;;  %330 = sbr.rel (%p1592_p10) target bundleno = 517 (0x205), region = 60 }
  0x20   : > { %1274 = dma.vmem_to_smem (!%p1272_p12), %s300_s29, 16, %s1479_s11, [#allocation5]  }
  0x24   : > { %1456 = dma.done.wait (%p1279_p9), [#allocation5], 16  }
  0x25   : > { %1458 = vsyncadd (%p1279_p9), [#allocation5], 4294967280 }
  0x26   : > { %336 = sfence }
  0x27   : > { %s1965_s1 = sld [smem:[#allocation9_spill]]  ;;  %v1480_v2 = vmov 1   ;;  %v1481_v3 = vmov 0   ;;  %v512_v6 = vld [vmem:[%s1952_s2 + $0x18] sm:$0xff]  ;;  %v510_v7 = vld [vmem:[%s1952_s2 + $0x8] sm:$0xff]  ;;  %v565_v8 = vld [vmem:[%s1953_s3] sm:$0xff]  ;;  %v404_v34 = vlaneseq }
  0x28   : > { %1319 = vset.pattern.permute.xlu0 %v1480_v2  ;;  %1320 = vset.pattern.permute.xlu1 %v1481_v3  ;;  %v511_v9 = vld [vmem:[%s1952_s2 + $0x10] sm:$0xff]  ;;  %v509_v10 = vld [vmem:[%s1952_s2] sm:$0xff]  ;;  %v566_v12 = vld [vmem:[%s1953_s3 + $0x8] sm:$0xff]  ;;  %v1482_v17 = vmov 0.0   ;;  %s1246_s28 = sshll.u32 %s1564_s9, 2  ;;  %s920_s21 = sld [smem:[#allocation3]] }
  0x29   : > { %v567_v11 = vld [vmem:[%s1953_s3 + $0x10] sm:$0xff]  ;;  %v568_v13 = vld [vmem:[%s1953_s3 + $0x18] sm:$0xff]  ;;  %v865_v14 = vld [vmem:[%s1955_s5 + $0x8] sm:$0xff]  ;;  %734 = vmatprep.mubr.f32.mxu0 %v1482_v17  ;;  %823 = vmatprep.mubr.f32.mxu1 %v1482_v17  ;;  %p370_p9 = scmp.lt.s32.totalorder %s1246_s28, 7  ;;  %s1257_s22 = sld [smem:[#allocation3 + $0x1]]  ;;  %v1690_v35 = vshrl.u32 %v404_v34, 7 }
  0x2a   : > { %v927_v15 = vld [vmem:[%s1957_s7] sm:$0xff]  ;;  %v929_v16 = vld [vmem:[%s1957_s7 + $0x10] sm:$0xff]  ;;  %v867_v20 = vld [vmem:[%s1955_s5 + $0x18] sm:$0xff]  ;;  %vm657_vm0 = vcmask 261120   ;;  %s1139_s13 = sld [smem:[#allocation2]]  ;;  %s366_s14 = sand.u32 1, %s1469_s16  }
  0x2b   : > { %v864_v18 = vld [vmem:[%s1955_s5] sm:$0xff]  ;;  %v866_v19 = vld [vmem:[%s1955_s5 + $0x10] sm:$0xff]  ;;  %s1971_s28 = smov (!%p370_p9, %s1246_s28), 7  ;;  %v928_v21 = vld [vmem:[%s1957_s7 + $0x8] sm:$0xff]  ;;  %v406_v38 = vsub.s32 0, %v1690_v35  ;;  %v410_v39 = vsub.s32 1, %v1690_v35 }
  0x2c   : > { %s1247_s19 = sshll.u32 %s1971_s28, 1  ;;  %v1033_v22 = vld [vmem:[%s1958_s8] sm:$0xff]  ;;  %v930_v23 = vld [vmem:[%s1957_s7 + $0x18] sm:$0xff]  ;;  %v1034_v32 = vld [vmem:[%s1958_s8 + $0x8] sm:$0xff]  ;;  %v414_v40 = vsub.s32 2, %v1690_v35  ;;  %v418_v41 = vsub.s32 3, %v1690_v35 }
  0x2d   : > { %v382_v0 = vld [vmem:[%s1965_s1 + $0x18] sm:$0xff]  ;;  %v381_v1 = vld [vmem:[%s1965_s1 + $0x10] sm:$0xff]  ;;  %v380_v4 = vld [vmem:[%s1965_s1 + $0x8] sm:$0xff]  ;;  %s1264_s26 = sshll.u32 %s1564_s9, 6  ;;  %vm1150_vm1 = vcmp.lt.s32.totalorder %v404_v34, 512  ;;  %s1154_s30 = scalar_lea.sflag [#allocation4], %s366_s14 }
  0x2e   : > { %453 = vperm.xlu0 %1319, %v382_v0   ;;  %395 = vperm.xlu1 %1320, %v381_v1   ;;  %v379_v5 = vld [vmem:[%s1965_s1] sm:$0xff]  ;;  %s373_s1 = scalar_lea.vmem %s1950_s0, %s1247_s19  ;;  %v921_v25 = vstv %s920_s21  ;;  %v1036_v31 = vld [vmem:[%s1958_s8 + $0x18] sm:$0xff]  ;;  %v1035_v33 = vld [vmem:[%s1958_s8 + $0x10] sm:$0xff]  ;;  %s1245_s19 = sshll.u32 %s366_s14, 2 }
  0x2f   : > { %v376_v24 = vld [vmem:[%s373_s1] ss:$2 sm:$0xf]  ;;  %v1248_v26 = vld [vmem:[%s373_s1 + $0x1] ss:$2 sm:$0xf]  ;;  %v924_v27 = vstv %s1257_s22  ;;  %s1915_s29 = scalar_lea.hbm %s1960_s10, %s1264_s26 }
  0x30   : > { %v922_v28 = vmul.f32 %v921_v25, %v376_v24  ;;  %v925_v29 = vmul.f32 %v1248_v26, %v924_v27  ;;  %v1696_v44 = vrot.slane %v1248_v26, %v406_v38  ;;  %v1698_v45 = vrot.slane %v1248_v26, %v410_v39  ;;  %s368_s27 = scalar_lea.vmem [#allocation6], %s1245_s19  ;;  %s1484_s12 = smov [#allocation6]  }
  0x31   : > { %v1700_v46 = vrot.slane %v1248_v26, %v414_v40  ;;  %v1702_v47 = vrot.slane %v1248_v26, %v418_v41  ;;  %v1704_v48 = vrot.slane %v376_v24, %v406_v38  ;;  %v1706_v49 = vrot.slane %v376_v24, %v410_v39  ;;  %s1168_s1 = sshll.u32 %s368_s27, 4  ;;  %s1417_s9 = sshll.u32 %s1484_s12, 4  ;;  %s1169_s1 = int_to_ptr.vmem [resolvable:$true] %s1168_s1  ;;  %s1418_s9 = int_to_ptr.vmem [resolvable:$false] %s1417_s9 }
  0x32   : > { %1321 = vset.pattern.permute.xlu1 %v1480_v2  ;;  %445 = vperm.xlu0 %1319, %v380_v4   ;;  %v1678_v30 = vadd.f32 %v925_v29, %v922_v28  ;;  %v1708_v50 = vrot.slane %v376_v24, %v414_v40  ;;  %v1710_v51 = vrot.slane %v376_v24, %v418_v41  ;;  %s1413_s11 = scalar_lea.vmem %s1169_s1, 64  ;;  %s1419_s28 = scalar_lea.vmem %s1418_s9, 128 }
  0x33   : > { %449 = vperm.xlu1 %1321, %v381_v1   ;;  %p1414_p10 = scmp.ne.s32.totalorder %s1169_s1, %s1413_s11  ;;  %p1420_p13 = scmp.lt.s32.totalorder %s1169_s1, %s1418_s9 }
  0x34   : > { %p1421_p0 = scmp.lt.s32.totalorder %s1419_s28, %s1413_s11 }
  0x35   : > { %p1415_p11 = pnand %p1414_p10, %p1581_p5 }
  0x36   : > { %1323 = vset.pattern.permute.xlu0 %v1481_v3  ;;  %p1422_p1 = por %p1421_p0, %p1420_p13 }
  0x37   : > { %1322 = vset.pattern.permute.xlu1 %v1481_v3  ;;  %400 = vperm.xlu0 %1323, %v382_v0   ;;  %p1416_p12 = pneg %p1415_p11 }
  0x38   : > { %390 = vperm.xlu1 %1322, %v380_v4  }
  0x39   : > { %p1423_p2 = pnand %p1422_p1, %p1416_p12 }
  0x3b   : > { %385 = vperm.xlu0 %1323, %v379_v5  }
  0x3c   : > { %530 = vperm.xlu1 %1322, %v512_v6  }
  0x3f   : > { %520 = vperm.xlu0 %1323, %v510_v7  }
  0x40   : > { %1324 = vset.pattern.permute.xlu1 %v1480_v2 }
  0x41   : > { %441 = vperm.xlu1 %1324, %v379_v5  }
  0x43   : > { %571 = vperm.xlu0 %1323, %v565_v8  }
  0x45   : > { %1325 = vset.pattern.permute.xlu1 %v1481_v3 }
  0x46   : > { %525 = vperm.xlu1 %1325, %v511_v9  }
  0x47   : > { %1326 = vset.pattern.permute.xlu0 %v1480_v2 }
  0x48   : > { %606 = vperm.xlu0 %1326, %v565_v8  }
  0x4a   : > { %515 = vperm.xlu1 %1325, %v509_v10  }
  0x4c   : > { %614 = vperm.xlu0 %1326, %v567_v11  }
  0x4e   : > { %576 = vperm.xlu1 %1325, %v566_v12  }
  0x50   : > { %618 = vperm.xlu0 %1326, %v568_v13  }
  0x52   : > { %1327 = vset.pattern.permute.xlu1 %v1480_v2 }
  0x53   : > { %610 = vperm.xlu1 %1327, %v566_v12  }
  0x54   : > { %1329 = vset.pattern.permute.xlu0 %v1481_v3 }
  0x55   : > { %875 = vperm.xlu0 %1329, %v865_v14  }
  0x57   : > { %1328 = vset.pattern.permute.xlu1 %v1481_v3 }
  0x58   : > { %581 = vperm.xlu1 %1328, %v567_v11  }
  0x59   : > { %933 = vperm.xlu0 %1329, %v927_v15  }
  0x5c   : > { %586 = vperm.xlu1 %1328, %v568_v13  }
  0x5d   : > { %943 = vperm.xlu0 %1329, %v929_v16  }
  0x60   : > { %870 = vperm.xlu1 %1328, %v864_v18  }
  0x61   : > { %1044 = vperm.xlu0 %1329, %v1034_v32  }
  0x64   : > { %880 = vperm.xlu1 %1328, %v866_v19  }
  0x65   : > { %1049 = vperm.xlu0 %1329, %v1035_v33  }
  0x68   : > { %885 = vperm.xlu1 %1328, %v867_v20  }
  0x6c   : > { %938 = vperm.xlu1 %1328, %v928_v21  }
  0x70   : > { %1039 = vperm.xlu1 %1328, %v1033_v22  }
  0x74   : > { %948 = vperm.xlu1 %1328, %v930_v23  }
  0x78   : > { %1054 = vperm.xlu1 %1328, %v1036_v31  }
  0xa9   : > { %v396_v36 = vpop.permute.xlu1 %395  ;;  %v454_v37 = vpop.permute.xlu0 %453 }
  0xaa   : > { %v489_v52 = vmul.f32 %v1696_v44, %v454_v37  ;;  %v490_v53 = vmul.f32 %v1698_v45, %v454_v37  ;;  %v491_v54 = vmul.f32 %v1700_v46, %v454_v37  ;;  %v492_v55 = vmul.f32 %v1702_v47, %v454_v37 }
  0xab   : > { %v432_v5 = vmul.f32 %v1704_v48, %v396_v36  ;;  %v433_v23 = vmul.f32 %v1706_v49, %v396_v36  ;;  %v434_v24 = vmul.f32 %v1708_v50, %v396_v36  ;;  %v435_v26 = vmul.f32 %v1710_v51, %v396_v36 }
  0xad   : > { %v446_v42 = vpop.permute.xlu0 %445 }
  0xae   : > { %v450_v43 = vpop.permute.xlu1 %449  ;;  %v481_v2 = vmul.f32 %v1696_v44, %v446_v42  ;;  %v482_v6 = vmul.f32 %v1698_v45, %v446_v42  ;;  %v483_v7 = vmul.f32 %v1700_v46, %v446_v42  ;;  %v484_v15 = vmul.f32 %v1702_v47, %v446_v42 }
  0xaf   : > { %v485_v14 = vmul.f32 %v1696_v44, %v450_v43  ;;  %v486_v19 = vmul.f32 %v1698_v45, %v450_v43  ;;  %v487_v20 = vmul.f32 %v1700_v46, %v450_v43  ;;  %v488_v31 = vmul.f32 %v1702_v47, %v450_v43 }
  0xb1   : > { %v501_v38 = vadd.f32 %v485_v14, %v432_v5  ;;  %v502_v39 = vadd.f32 %v486_v19, %v433_v23  ;;  %v503_v40 = vadd.f32 %v487_v20, %v434_v24 }
  0xb2   : > { %v401_v56 = vpop.permute.xlu0 %400 }
  0xb3   : > { %v436_v57 = vmul.f32 %v1704_v48, %v401_v56  ;;  %v437_v58 = vmul.f32 %v1706_v49, %v401_v56  ;;  %v438_v59 = vmul.f32 %v1708_v50, %v401_v56  ;;  %v439_v60 = vmul.f32 %v1710_v51, %v401_v56  ;;  %v391_v61 = vpop.permute.xlu1 %390 }
  0xb4   : > { %v428_v3 = vmul.f32 %v1704_v48, %v391_v61  ;;  %v429_v8 = vmul.f32 %v1706_v49, %v391_v61  ;;  %v430_v10 = vmul.f32 %v1708_v50, %v391_v61  ;;  %v431_v16 = vmul.f32 %v1710_v51, %v391_v61 }
  0xb5   : > { %v505_v62 = vadd.f32 %v489_v52, %v436_v57  ;;  %v506_v63 = vadd.f32 %v490_v53, %v437_v58  ;;  %v507_v0 = vadd.f32 %v491_v54, %v438_v59  ;;  %v508_v1 = vadd.f32 %v492_v55, %v439_v60 }
  0xb6   : > { %v386_v4 = vpop.permute.xlu0 %385  ;;  %v497_v22 = vadd.f32 %v481_v2, %v428_v3  ;;  %v498_v25 = vadd.f32 %v482_v6, %v429_v8  ;;  %v499_v27 = vadd.f32 %v483_v7, %v430_v10  ;;  %v500_v32 = vadd.f32 %v484_v15, %v431_v16 }
  0xb7   : > { %v531_v9 = vpop.permute.xlu1 %530  ;;  %v424_v41 = vmul.f32 %v1704_v48, %v386_v4  ;;  %v425_v42 = vmul.f32 %v1706_v49, %v386_v4  ;;  %v426_v52 = vmul.f32 %v1708_v50, %v386_v4  ;;  %v427_v55 = vmul.f32 %v1710_v51, %v386_v4 }
  0xb8   : > { %v545_v11 = vadd.f32 %v531_v9, %v505_v62  ;;  %v546_v12 = vadd.f32 %v531_v9, %v506_v63  ;;  %v547_v13 = vadd.f32 %v531_v9, %v507_v0  ;;  %v548_v18 = vadd.f32 %v531_v9, %v508_v1 }
  0xb9   : > { %v504_v58 = vadd.f32 %v488_v31, %v435_v26 }
  0xba   : > { %1330 = vtanh.f32 %v545_v11  ;;  %v521_v21 = vpop.permute.xlu0 %520 }
  0xbb   : > { %1332 = vtanh.f32 %v546_v12  ;;  %v537_v28 = vadd.f32 %v521_v21, %v497_v22  ;;  %v538_v33 = vadd.f32 %v521_v21, %v498_v25  ;;  %v539_v37 = vadd.f32 %v521_v21, %v499_v27 }
  0xbc   : > { %1334 = vtanh.f32 %v547_v13  ;;  %v442_v29 = vpop.permute.xlu1 %441  ;;  %v540_v36 = vadd.f32 %v521_v21, %v500_v32 }
  0xbd   : > { %1336 = vtanh.f32 %v548_v18  ;;  %v477_v53 = vmul.f32 %v1696_v44, %v442_v29  ;;  %v478_v54 = vmul.f32 %v1698_v45, %v442_v29  ;;  %v479_v43 = vmul.f32 %v1700_v46, %v442_v29 }
  0xbe   : > { %1338 = vtanh.f32 %v537_v28  ;;  %v480_v56 = vmul.f32 %v1702_v47, %v442_v29  ;;  %v1744_v59 = vpop.permute.xlu0 %571 }
  0xbf   : > { %1340 = vtanh.f32 %v538_v33  ;;  %v493_v0 = vadd.f32 %v477_v53, %v424_v41  ;;  %v494_v1 = vadd.f32 %v478_v54, %v425_v42  ;;  %v495_v2 = vadd.f32 %v479_v43, %v426_v52  ;;  %v653_v33 = vld [vmem:[%s1954_s4] sm:$0xff]  ;;  %v655_v42 = vld [vmem:[%s1954_s4 + $0x10] sm:$0xff]  ;;  %v656_v53 = vld [vmem:[%s1954_s4 + $0x18] sm:$0xff] }
  0xc0   : > { %1342 = vtanh.f32 %v539_v37  ;;  %v496_v4 = vadd.f32 %v480_v56, %v427_v55 }
  0xc1   : > { %v526_v57 = vpop.permute.xlu1 %525  ;;  %1344 = vtanh.f32 %v540_v36 }
  0xc2   : > { %v541_v60 = vadd.f32 %v526_v57, %v501_v38  ;;  %v542_v61 = vadd.f32 %v526_v57, %v502_v39  ;;  %v543_v62 = vadd.f32 %v526_v57, %v503_v40  ;;  %v544_v63 = vadd.f32 %v526_v57, %v504_v58  ;;  %v654_v40 = vld [vmem:[%s1954_s4 + $0x8] sm:$0xff] }
  0xc3   : > { %v1750_v11 = vpop.permute.xlu0 %606 }
  0xc4   : > { %1346 = vtanh.f32 %v541_v60 }
  0xc5   : > { %1348 = vtanh.f32 %v542_v61  ;;  %v516_v3 = vpop.permute.xlu1 %515 }
  0xc6   : > { %1350 = vtanh.f32 %v543_v62  ;;  %v533_v5 = vadd.f32 %v516_v3, %v493_v0  ;;  %v534_v6 = vadd.f32 %v516_v3, %v494_v1  ;;  %v535_v7 = vadd.f32 %v516_v3, %v495_v2 }
  0xc7   : > { %v1746_v8 = vpop.eup %1330  ;;  %1352 = vtanh.f32 %v544_v63  ;;  %v536_v9 = vadd.f32 %v516_v3, %v496_v4  ;;  %v1762_v18 = vpop.permute.xlu0 %614 }
  0xc8   : > { %v1748_v10 = vpop.eup %1332  ;;  %1354 = vtanh.f32 %v533_v5 }
  0xc9   : > { %v1752_v12 = vpop.eup %1334  ;;  %1356 = vtanh.f32 %v534_v6  ;;  %694 = vmatprep.subr.mxu0 %v1748_v10  ;;  %v1755_v13 = vpop.permute.xlu1 %576 }
  0xca   : > { %v1757_v14 = vpop.eup %1336  ;;  %1358 = vtanh.f32 %v535_v7  ;;  %695 = vmatpush1.msra.mxu0 %v1746_v8 }
  0xcb   : > { %1360 = vtanh.f32 %v536_v9  ;;  %783 = vmatprep.subr.mxu1 %v1757_v14  ;;  %v1339_v15 = vpop.eup %1338  ;;  %v1768_v27 = vpop.permute.xlu0 %618 }
  0xcc   : > { %784 = vmatpush1.msra.mxu1 %v1752_v12  ;;  %v1341_v16 = vpop.eup %1340 }
  0xcd   : > { %v1343_v20 = vpop.eup %1342 }
  0xce   : > { %v1764_v19 = vpop.permute.xlu1 %610  ;;  %v1345_v21 = vpop.eup %1344 }
  0xd0   : > { %v1775_v38 = vpop.permute.xlu0 %875 }
  0xd1   : > { %v1347_v22 = vpop.eup %1346 }
  0xd2   : > { %v1349_v23 = vpop.eup %1348 }
  0xd3   : > { %v1351_v24 = vpop.eup %1350  ;;  %696 = vmatprep.subr.mxu0 %v1349_v23  ;;  %v1766_v25 = vpop.permute.xlu1 %581 }
  0xd4   : > { %v1353_v26 = vpop.eup %1352  ;;  %697 = vmatpush1.msra.mxu0 %v1347_v22  ;;  %v934_v52 = vpop.permute.xlu0 %933 }
  0xd5   : > { %v1355_v28 = vpop.eup %1354  ;;  %785 = vmatprep.subr.mxu1 %v1353_v26  ;;  %698 = vmatprep.subr.mxu0 %v1341_v16 }
  0xd6   : > { %v1357_v29 = vpop.eup %1356  ;;  %786 = vmatpush1.msra.mxu1 %v1351_v24  ;;  %699 = vmatpush1.msra.mxu0 %v1339_v15  ;;  %v951_v43 = vmul.f32 %v1355_v28, %v934_v52 }
  0xd7   : > { %v1359_v31 = vpop.eup %1358  ;;  %787 = vmatprep.subr.mxu1 %v1345_v21  ;;  %700 = vmatprep.subr.mxu0 %v1357_v29  ;;  %v1770_v32 = vpop.permute.xlu1 %586  ;;  %v952_v55 = vmul.f32 %v1357_v29, %v934_v52 }
  0xd8   : > { %v1361_v37 = vpop.eup %1360  ;;  %788 = vmatpush1.msra.mxu1 %v1343_v20  ;;  %701 = vmatpush1.msra.mxu0 %v1355_v28  ;;  %v944_v54 = vpop.permute.xlu0 %943  ;;  %v953_v56 = vmul.f32 %v1359_v31, %v934_v52 }
  0xd9   : > { %789 = vmatprep.subr.mxu1 %v1361_v37  ;;  %1249 = vmatmul.mubr.msk.f32.vlgmr.msra.gmra.mxu0 %vm657_vm0, %v653_v33  ;;  %v954_v57 = vmul.f32 %v1361_v37, %v934_v52  ;;  %v959_v0 = vmul.f32 %v1347_v22, %v944_v54  ;;  %v960_v1 = vmul.f32 %v1349_v23, %v944_v54 }
  0xda   : > { %790 = vmatpush1.msra.mxu1 %v1359_v31  ;;  %740 = vmatprep.mubr.f32.mxu0 %v1482_v17  ;;  %v961_v2 = vmul.f32 %v1351_v24, %v944_v54  ;;  %v962_v3 = vmul.f32 %v1353_v26, %v944_v54 }
  0xdb   : > { %1253 = vmatmul.mubr.msk.f32.vlgmr.msra.gmra.mxu1 %vm657_vm0, %v653_v33  ;;  %v1779_v39 = vpop.permute.xlu1 %870 }
  0xdc   : > { %829 = vmatprep.mubr.f32.mxu1 %v1482_v17 }
  0xdd   : > { %1250 = vmatmul.mubr.msk.f32.gmra.mxu0 %vm657_vm0, %v654_v40 }
  0xde   : > { %746 = vmatprep.mubr.f32.mxu0 %v1482_v17 }
  0xdf   : > { %1254 = vmatmul.mubr.msk.f32.gmra.mxu1 %vm657_vm0, %v654_v40  ;;  %v1788_v41 = vpop.permute.xlu1 %880 }
  0xe0   : > { %835 = vmatprep.mubr.f32.mxu1 %v1482_v17 }
  0xe1   : > { %1251 = vmatmul.mubr.msk.f32.gmra.mxu0 %vm657_vm0, %v655_v42 }
  0xe2   : > { %752 = vmatprep.mubr.f32.mxu0 %v1482_v17 }
  0xe3   : > { %1255 = vmatmul.mubr.msk.f32.gmra.mxu1 %vm657_vm0, %v655_v42  ;;  %v1797_v36 = vpop.permute.xlu1 %885 }
  0xe4   : > { %841 = vmatprep.mubr.f32.mxu1 %v1482_v17 }
  0xe5   : > { %1252 = vmatmul.mubr.msk.f32.gmra.mxu0 %vm657_vm0, %v656_v53 }
  0xe7   : > { %1256 = vmatmul.mubr.msk.f32.gmra.mxu1 %vm657_vm0, %v656_v53  ;;  %v939_v58 = vpop.permute.xlu1 %938  ;;  %v1483_v53 = vmov 1966171168  }
  0xe8   : > { %v955_v60 = vmul.f32 %v1339_v15, %v939_v58  ;;  %v956_v61 = vmul.f32 %v1341_v16, %v939_v58  ;;  %v957_v62 = vmul.f32 %v1343_v20, %v939_v58  ;;  %v958_v63 = vmul.f32 %v1345_v21, %v939_v58 }
  0xe9   : > { %v1010_v54 = vunpack.c.l.s4 %v1483_v53 }
  0xea   : > { %v967_v4 = vadd.f32 %v955_v60, %v951_v43  ;;  %v976_v17 = vadd.f32 %v956_v61, %v952_v55  ;;  %v985_v5 = vadd.f32 %v957_v62, %v953_v56  ;;  %v994_v6 = vadd.f32 %v958_v63, %v954_v57 }
  0xeb   : > { %v1806_v7 = vpop.permute.xlu1 %1039  ;;  %v1011_v60 = vunpack.c.0.s8 %v1010_v54  ;;  %v625_v54 = vmul.f32 %v1764_v19, %v1696_v44 }
  0xec   : > { %v968_v9 = vadd.f32 %v967_v4, %v959_v0  ;;  %v977_v28 = vadd.f32 %v976_v17, %v960_v1  ;;  %v986_v29 = vadd.f32 %v985_v5, %v961_v2  ;;  %v995_v31 = vadd.f32 %v994_v6, %v962_v3 }
  0xed   : > { %v1813_v4 = vsub.s32 %v1011_v60, %v1690_v35  ;;  %v621_v35 = vmul.f32 %v1750_v11, %v1696_v44 }
  0xef   : > { %v949_v33 = vpop.permute.xlu1 %948 }
  0xf0   : > { %v963_v15 = vmul.f32 %v1746_v8, %v949_v33  ;;  %v964_v16 = vmul.f32 %v1748_v10, %v949_v33  ;;  %v965_v20 = vmul.f32 %v1752_v12, %v949_v33  ;;  %v966_v21 = vmul.f32 %v1757_v14, %v949_v33 }
  0xf2   : > { %v969_v22 = vadd.f32 %v968_v9, %v963_v15  ;;  %v978_v23 = vadd.f32 %v977_v28, %v964_v16  ;;  %v987_v24 = vadd.f32 %v986_v29, %v965_v20  ;;  %v996_v26 = vadd.f32 %v995_v31, %v966_v21 }
  0xf3   : > { %v623_v21 = vmul.f32 %v1750_v11, %v1700_v46 }
  0xf4   : > { %v970_v37 = vrot.slane %v969_v22, 4  ;;  %v979_v40 = vrot.slane %v978_v23, 4  ;;  %v988_v42 = vrot.slane %v987_v24, 4  ;;  %v997_v52 = vrot.slane %v996_v26, 4 }
  0xf6   : > { %v971_v43 = vadd.f32 %v970_v37, %v969_v22  ;;  %v980_v55 = vadd.f32 %v979_v40, %v978_v23  ;;  %v989_v56 = vadd.f32 %v988_v42, %v987_v24  ;;  %v998_v8 = vadd.f32 %v997_v52, %v996_v26 }
  0xf7   : > { %v622_v22 = vmul.f32 %v1750_v11, %v1698_v45  ;;  %v624_v23 = vmul.f32 %v1750_v11, %v1702_v47  ;;  %v589_v24 = vmul.f32 %v1744_v59, %v1704_v48  ;;  %v591_v26 = vmul.f32 %v1744_v59, %v1708_v50 }
  0xf8   : > { %v972_v57 = vrot.slane %v971_v43, 2  ;;  %v981_v10 = vrot.slane %v980_v55, 2  ;;  %v990_v58 = vrot.slane %v989_v56, 2  ;;  %v999_v12 = vrot.slane %v998_v8, 2 }
  0xf9   : > { %v592_v37 = vmul.f32 %v1744_v59, %v1710_v51  ;;  %v637_v40 = vadd.f32 %v621_v35, %v589_v24  ;;  %v639_v42 = vadd.f32 %v623_v21, %v591_v26  ;;  %v627_v11 = vmul.f32 %v1764_v19, %v1700_v46 }
  0xfa   : > { %v973_v14 = vadd.f32 %v972_v57, %v971_v43  ;;  %v982_v61 = vadd.f32 %v981_v10, %v980_v55  ;;  %v991_v62 = vadd.f32 %v990_v58, %v989_v56  ;;  %v1000_v63 = vadd.f32 %v999_v12, %v998_v8 }
  0xfb   : > { %v640_v53 = vadd.f32 %v624_v23, %v592_v37  ;;  %v626_v43 = vmul.f32 %v1764_v19, %v1698_v45  ;;  %v628_v55 = vmul.f32 %v1764_v19, %v1702_v47  ;;  %v597_v56 = vmul.f32 %v1766_v25, %v1704_v48 }
  0xfc   : > { %v974_v0 = vrot.slane %v973_v14, 1  ;;  %v983_v1 = vrot.slane %v982_v61, 1  ;;  %v992_v2 = vrot.slane %v991_v62, 1  ;;  %v1001_v3 = vrot.slane %v1000_v63, 1 }
  0xfd   : > { %v599_v8 = vmul.f32 %v1766_v25, %v1708_v50  ;;  %v631_v57 = vmul.f32 %v1762_v18, %v1700_v46  ;;  %v593_v10 = vmul.f32 %v1755_v13, %v1704_v48  ;;  %v595_v58 = vmul.f32 %v1755_v13, %v1708_v50 }
  0xfe   : > { %v975_v17 = vadd.f32 %v974_v0, %v973_v14  ;;  %v984_v5 = vadd.f32 %v983_v1, %v982_v61  ;;  %v993_v6 = vadd.f32 %v992_v2, %v991_v62  ;;  %v1002_v9 = vadd.f32 %v1001_v3, %v1000_v63 }
  0xff   : > { %v594_v19 = vmul.f32 %v1755_v13, %v1706_v49  ;;  %v596_v12 = vmul.f32 %v1755_v13, %v1710_v51  ;;  %v598_v14 = vmul.f32 %v1766_v25, %v1706_v49  ;;  %v630_v61 = vmul.f32 %v1762_v18, %v1698_v45 }
 0x100   : > { %v1007_v28 = vcombine.low %v975_v17, %v984_v5  ;;  %v1008_v29 = vcombine.low %v993_v6, %v1002_v9  ;;  %v600_v62 = vmul.f32 %v1766_v25, %v1710_v51  ;;  %v632_v63 = vmul.f32 %v1762_v18, %v1702_v47 }
 0x101   : > { %v641_v2 = vadd.f32 %v625_v54, %v593_v10  ;;  %v643_v3 = vadd.f32 %v627_v11, %v595_v58  ;;  %v642_v17 = vadd.f32 %v626_v43, %v594_v19  ;;  %v644_v6 = vadd.f32 %v628_v55, %v596_v12 }
 0x102   : > { %v1015_v31 = vrot.slane %v1007_v28, %v1813_v4  ;;  %v1022_v33 = vrot.slane %v1008_v29, %v1813_v4  ;;  %v647_v28 = vadd.f32 %v631_v57, %v599_v8  ;;  %v601_v25 = vmul.f32 %v1770_v32, %v1704_v48 }
 0x103   : > { %v646_v21 = vadd.f32 %v630_v61, %v598_v14  ;;  %v602_v54 = vmul.f32 %v1770_v32, %v1706_v49  ;;  %v636_v10 = vmul.f32 %v1768_v27, %v1702_v47 }
 0x104   : > { %v1023_v15 = vcombine.low %v1015_v31, %v1022_v33 }
 0x106   : > { %v1030_v16 = vrot.slane %v1023_v15, %v1813_v4 }
 0x108   : > { %v1819_v20 = vadd.f32 %v1030_v16, %v1678_v30  ;;  %v590_v30 = vmul.f32 %v1744_v59, %v1706_v49  ;;  %v629_v59 = vmul.f32 %v1762_v18, %v1696_v44  ;;  %v633_v18 = vmul.f32 %v1768_v27, %v1696_v44 }
 0x109   : > { %v635_v44 = vmul.f32 %v1768_v27, %v1700_v46 }
 0x10a   : > { %v638_v52 = vadd.f32 %v622_v22, %v590_v30  ;;  %v645_v9 = vadd.f32 %v629_v59, %v597_v56  ;;  %v648_v22 = vadd.f32 %v632_v63, %v600_v62  ;;  %v603_v30 = vmul.f32 %v1770_v32, %v1708_v50 }
 0x10b   : > { %v604_v59 = vmul.f32 %v1770_v32, %v1710_v51  ;;  %v649_v12 = vadd.f32 %v633_v18, %v601_v25 }
 0x10c   : > { %v651_v51 = vadd.f32 %v635_v44, %v603_v30 }
 0x199   : > { %v736_v60 = vpop.f32.mrf.mxu0 }
 0x19a   : > { %v848_v0 = vadd.f32 %v736_v60, %v637_v40 }
 0x19b   : > { %v825_v1 = vpop.f32.mrf.mxu1  ;;  %v738_v13 = vpop.f32.mrf.mxu0 }
 0x19c   : > { %v850_v5 = vadd.f32 %v825_v1, %v639_v42  ;;  %v888_v29 = vadd.f32 %v1779_v39, %v848_v0  ;;  %v849_v31 = vadd.f32 %v738_v13, %v638_v52  ;;  %v652_v1 = vadd.f32 %v636_v10, %v604_v59 }
 0x19d   : > { %v827_v33 = vpop.f32.mrf.mxu1  ;;  %v742_v35 = vpop.f32.mrf.mxu0 }
 0x19e   : > { %v890_v15 = vadd.f32 %v1779_v39, %v850_v5  ;;  %v851_v16 = vadd.f32 %v827_v33, %v640_v53  ;;  %1362 = vtanh.f32 %v888_v29  ;;  %v889_v23 = vadd.f32 %v1779_v39, %v849_v31  ;;  %v1045_v31 = vpop.permute.xlu0 %1044 }
 0x19f   : > { %v852_v24 = vadd.f32 %v742_v35, %v641_v2  ;;  %v831_v26 = vpop.f32.mrf.mxu1  ;;  %v744_v40 = vpop.f32.mrf.mxu0 }
 0x1a0   : > { %1364 = vtanh.f32 %v890_v15  ;;  %v891_v48 = vadd.f32 %v1779_v39, %v851_v16  ;;  %v854_v37 = vadd.f32 %v831_v26, %v643_v3  ;;  %v853_v52 = vadd.f32 %v744_v40, %v642_v17 }
 0x1a1   : > { %1366 = vtanh.f32 %v889_v23  ;;  %v892_v42 = vadd.f32 %v1775_v38, %v852_v24  ;;  %v833_v53 = vpop.f32.mrf.mxu1  ;;  %v748_v43 = vpop.f32.mrf.mxu0  ;;  %v634_v39 = vmul.f32 %v1768_v27, %v1698_v45 }
 0x1a2   : > { %1368 = vtanh.f32 %v891_v48  ;;  %v894_v11 = vadd.f32 %v1775_v38, %v854_v37  ;;  %v855_v50 = vadd.f32 %v833_v53, %v644_v6  ;;  %v893_v55 = vadd.f32 %v1775_v38, %v853_v52  ;;  %v1050_v23 = vpop.permute.xlu0 %1049 }
 0x1a3   : > { %1370 = vtanh.f32 %v892_v42  ;;  %v856_v46 = vadd.f32 %v748_v43, %v645_v9  ;;  %v837_v56 = vpop.f32.mrf.mxu1  ;;  %v750_v57 = vpop.f32.mrf.mxu0  ;;  %v650_v63 = vadd.f32 %v634_v39, %v602_v54 }
 0x1a4   : > { %1372 = vtanh.f32 %v894_v11  ;;  %v895_v8 = vadd.f32 %v1775_v38, %v855_v50  ;;  %v858_v49 = vadd.f32 %v837_v56, %v647_v28  ;;  %v857_v45 = vadd.f32 %v750_v57, %v646_v21  ;;  %v1055_v50 = vpop.permute.xlu1 %1054 }
 0x1a5   : > { %1374 = vtanh.f32 %v893_v55  ;;  %v896_v58 = vadd.f32 %v1788_v41, %v856_v46  ;;  %v839_v19 = vpop.f32.mrf.mxu1  ;;  %v754_v61 = vpop.f32.mrf.mxu0 }
 0x1a6   : > { %1376 = vtanh.f32 %v895_v8  ;;  %v898_v60 = vadd.f32 %v1788_v41, %v858_v49  ;;  %v859_v14 = vadd.f32 %v839_v19, %v648_v22  ;;  %v897_v32 = vadd.f32 %v1788_v41, %v857_v45 }
 0x1a7   : > { %1378 = vtanh.f32 %v896_v58  ;;  %v860_v38 = vadd.f32 %v754_v61, %v649_v12  ;;  %v843_v62 = vpop.f32.mrf.mxu1  ;;  %v756_v0 = vpop.f32.mrf.mxu0 }
 0x1a8   : > { %1380 = vtanh.f32 %v898_v60  ;;  %v899_v47 = vadd.f32 %v1788_v41, %v859_v14  ;;  %v862_v27 = vadd.f32 %v843_v62, %v651_v51  ;;  %v861_v3 = vadd.f32 %v756_v0, %v650_v63 }
 0x1a9   : > { %1382 = vtanh.f32 %v897_v32  ;;  %v900_v2 = vadd.f32 %v1797_v36, %v860_v38  ;;  %v845_v17 = vpop.f32.mrf.mxu1 }
 0x1aa   : > { %1384 = vtanh.f32 %v899_v47  ;;  %v902_v5 = vadd.f32 %v1797_v36, %v862_v27  ;;  %v863_v13 = vadd.f32 %v845_v17, %v652_v1  ;;  %v901_v6 = vadd.f32 %v1797_v36, %v861_v3 }
 0x1ab   : > { %1386 = vtanh.f32 %v900_v2  ;;  %v1363_v9 = vpop.eup %1362 }
 0x1ac   : > { %1388 = vtanh.f32 %v902_v5  ;;  %v903_v28 = vadd.f32 %v1797_v36, %v863_v13  ;;  %v1057_v30 = vmul.f32 %v1363_v9, %v1806_v7 }
 0x1ad   : > { %v1365_v41 = vpop.eup %1364  ;;  %1390 = vtanh.f32 %v901_v6 }
 0x1ae   : > { %v1367_v29 = vpop.eup %1366  ;;  %1392 = vtanh.f32 %v903_v28  ;;  %v1059_v40 = vmul.f32 %v1365_v41, %v1806_v7 }
 0x1af   : > { %v1369_v33 = vpop.eup %1368  ;;  %v1058_v52 = vmul.f32 %v1367_v29, %v1806_v7 }
 0x1b0   : > { %v1371_v25 = vpop.eup %1370  ;;  %v1060_v43 = vmul.f32 %v1369_v33, %v1806_v7 }
 0x1b1   : > { %v1373_v18 = vpop.eup %1372  ;;  %v1061_v35 = vmul.f32 %v1371_v25, %v1045_v31 }
 0x1b2   : > { %v1375_v15 = vpop.eup %1374  ;;  %v1063_v22 = vmul.f32 %v1373_v18, %v1045_v31 }
 0x1b3   : > { %v1377_v16 = vpop.eup %1376  ;;  %v1062_v26 = vmul.f32 %v1375_v15, %v1045_v31  ;;  %v1073_v54 = vadd.f32 %v1061_v35, %v1057_v30 }
 0x1b4   : > { %v1379_v21 = vpop.eup %1378  ;;  %v1064_v37 = vmul.f32 %v1377_v16, %v1045_v31  ;;  %v1091_v55 = vadd.f32 %v1063_v22, %v1059_v40 }
 0x1b5   : > { %v1381_v24 = vpop.eup %1380  ;;  %v1065_v48 = vmul.f32 %v1379_v21, %v1050_v23  ;;  %v1082_v59 = vadd.f32 %v1062_v26, %v1058_v52 }
 0x1b6   : > { %v1383_v36 = vpop.eup %1382  ;;  %v1067_v44 = vmul.f32 %v1381_v24, %v1050_v23  ;;  %v1100_v10 = vadd.f32 %v1064_v37, %v1060_v43 }
 0x1b7   : > { %v1385_v42 = vpop.eup %1384  ;;  %v1066_v53 = vmul.f32 %v1383_v36, %v1050_v23  ;;  %v1074_v56 = vadd.f32 %v1073_v54, %v1065_v48  ;;  %v1140_v48 = vstv %s1139_s13 }
 0x1b8   : > { %v1387_v11 = vpop.eup %1386  ;;  %v1068_v39 = vmul.f32 %v1385_v42, %v1050_v23  ;;  %v1092_v57 = vadd.f32 %v1091_v55, %v1067_v44 }
 0x1b9   : > { %v1389_v46 = vpop.eup %1388  ;;  %v1069_v8 = vmul.f32 %v1387_v11, %v1055_v50  ;;  %v1083_v19 = vadd.f32 %v1082_v59, %v1066_v53 }
 0x1ba   : > { %v1391_v49 = vpop.eup %1390  ;;  %v1071_v58 = vmul.f32 %v1389_v46, %v1055_v50  ;;  %v1101_v14 = vadd.f32 %v1100_v10, %v1068_v39 }
 0x1bb   : > { %v1393_v45 = vpop.eup %1392  ;;  %v1075_v12 = vadd.f32 %v1074_v56, %v1069_v8  ;;  %v1070_v60 = vmul.f32 %v1391_v49, %v1055_v50 }
 0x1bc   : > { %v1093_v61 = vadd.f32 %v1092_v57, %v1071_v58  ;;  %v1072_v51 = vmul.f32 %v1393_v45, %v1055_v50 }
 0x1bd   : > { %v1076_v32 = vrot.slane %v1075_v12, 4  ;;  %v1084_v38 = vadd.f32 %v1083_v19, %v1070_v60 }
 0x1be   : > { %v1094_v7 = vrot.slane %v1093_v61, 4  ;;  %v1102_v62 = vadd.f32 %v1101_v14, %v1072_v51 }
 0x1bf   : > { %v1077_v63 = vadd.f32 %v1076_v32, %v1075_v12  ;;  %v1085_v47 = vrot.slane %v1084_v38, 4 }
 0x1c0   : > { %v1095_v27 = vadd.f32 %v1094_v7, %v1093_v61  ;;  %v1103_v0 = vrot.slane %v1102_v62, 4 }
 0x1c1   : > { %v1078_v1 = vrot.slane %v1077_v63, 2  ;;  %v1086_v2 = vadd.f32 %v1085_v47, %v1084_v38 }
 0x1c2   : > { %v1096_v3 = vrot.slane %v1095_v27, 2  ;;  %v1104_v17 = vadd.f32 %v1103_v0, %v1102_v62 }
 0x1c3   : > { %v1079_v5 = vadd.f32 %v1078_v1, %v1077_v63  ;;  %v1087_v13 = vrot.slane %v1086_v2, 2 }
 0x1c4   : > { %v1097_v6 = vadd.f32 %v1096_v3, %v1095_v27  ;;  %v1105_v9 = vrot.slane %v1104_v17, 2 }
 0x1c5   : > { %v1080_v28 = vrot.slane %v1079_v5, 1  ;;  %v1088_v41 = vadd.f32 %v1087_v13, %v1086_v2 }
 0x1c6   : > { %v1098_v29 = vrot.slane %v1097_v6, 1  ;;  %v1106_v31 = vadd.f32 %v1105_v9, %v1104_v17 }
 0x1c7   : > { %v1089_v33 = vrot.slane %v1088_v41, 1  ;;  %v1081_v18 = vadd.f32 %v1080_v28, %v1079_v5 }
 0x1c8   : > { %v1107_v25 = vrot.slane %v1106_v31, 1  ;;  %v1099_v16 = vadd.f32 %v1098_v29, %v1097_v6 }
 0x1c9   : > { %v1090_v15 = vadd.f32 %v1089_v33, %v1088_v41 }
 0x1ca   : > { %v1108_v35 = vadd.f32 %v1107_v25, %v1106_v31 }
 0x1cb   : > { %v1113_v21 = vcombine.low %v1081_v18, %v1090_v15 }
 0x1cc   : > { %v1114_v22 = vcombine.low %v1099_v16, %v1108_v35 }
 0x1cd   : > { %v1121_v23 = vrot.slane %v1113_v21, %v1813_v4 }
 0x1ce   : > { %v1128_v24 = vrot.slane %v1114_v22, %v1813_v4 }
 0x1d0   : > { %v1129_v26 = vcombine.low %v1121_v23, %v1128_v24 }
 0x1d2   : > { %v1136_v30 = vrot.slane %v1129_v26, %v1813_v4 }
 0x1d4   : > { %v1138_v36 = vadd.f32 %v1136_v30, %v1819_v20 }
 0x1d6   : > { %v1141_v37 = vadd.f32 %v1140_v48, %v1138_v36 }
 0x1d8   : > { %v1258_v40 = vmul.f32 -1.442695, %v1141_v37 }
 0x1da   : > { %1394 = vpow2.f32 %v1258_v40 }
 0x1e7   : > { %v1395_v44 = vpop.eup %1394 }
 0x1e8   : > { %v1145_v42 = vadd.f32 1.0, %v1395_v44 }
 0x1ea   : > { %1396 = vrcp.f32 %v1145_v42 }
 0x1f7   : > { %v1397_v4 = vpop.eup %1396 }
 0x1f8   : > { %1152 = vst.msk [vmem:[%s368_s27] sm:$0xf] %vm1150_vm1, %v1397_v4 }
 0x1f9   : > { %1426 = shalt.err (!%p1423_p2)
}
 0x1fa   : > { %s1427_s13 = scalar_lea.hbm %s1915_s29, 64  ;;  %s1431_s26 = scalar_lea.hbm %s1960_s10, 128 }
 0x1fb   : > { %p1428_p3 = scmp.ne.s32.totalorder %s1915_s29, %s1427_s13  ;;  %p1432_p8 = scmp.lt.s32.totalorder %s1915_s29, %s1960_s10 }
 0x1fc   : > { %p1433_p9 = scmp.lt.s32.totalorder %s1431_s26, %s1427_s13 }
 0x1fd   : > { %p1429_p4 = pnand %p1428_p3, %p1581_p5 }
 0x1fe   : > { %p1434_p10 = por %p1433_p9, %p1432_p8 }
 0x1ff   : > { %p1430_p7 = pneg %p1429_p4 }
 0x201   : > { %p1435_p11 = pnand %p1434_p10, %p1430_p7 }
 0x203   : > { %1438 = shalt.err (!%p1435_p11)
}
 0x204   : > { %1269 = dma.vmem_to_hbm [thread:$0]  (%p1581_p5), %s1169_s1, 64, %s1915_s29, %s1154_s30  }
 0x205 PF: > { %p1281_p12 = scmp.ge.s32.totalorder %s1477_s18, 2  ;;  %s1180_s22 = sand.u32 1, %s1465_s15  }
 0x206   : > { %s1181_s11 = scalar_lea.sflag [#allocation4], %s1180_s22 }
 0x207   : > { %p1276_p13 = pnand %p1281_p12, %p1585_p6 }
 0x209   : > { %p1277_p0 = pneg %p1276_p13 }
 0x20b   : > { %1460 = dma.done.wait (%p1277_p0), %s1181_s11, 64  }
 0x20c   : > { %1462 = vsyncadd (%p1277_p0), %s1181_s11, 4294967232  ;;  %p22_p1 = scmp.ge.s32.totalorder %s1568_s20, 4   ;;  %s1966_s15 = smov %s1469_s16 }
 0x20d   : > { %s1967_s16 = smov %s1473_s17  ;;  %s1968_s17 = smov %s1579_s23 }
 0x20e   : > { %s1969_s18 = smov %s1568_s20  ;;  %24 = sbr.rel (!%p22_p1) target bundleno = 7 (0x7), region = 101 }
 0x213   :  { %1186 = vsyncpa [#allocation4], 1 }
 0x214   :  { %1188 = vsyncpa [#allocation4 + $0x1], 1 }
 0x215   :  { %1189 = vsyncpa [#allocation5], 1 }
 0x216   :  { %1191 = vsyncpa [#allocation5 + $0x1], 1 }

</bundles_post_ra>
